<compile_context>
chip_gen: v5e
topology: v5e:2x2
jax: 0.10.0
libtpu: 0.0.40
codegen_flags: <defaults>
</compile_context>

<pallas_src>
import functools

import jax
import jax.numpy as jnp
from jax.experimental import pallas as pl
from jax.experimental.pallas import tpu as pltpu


def _round_up(x, m):
    return (x + m - 1) // m * m


def _cdiv(a, b):
    return -(-a // b)


# ---------------------------------------------------------------------------
# Kernel: fc1 (K=1, VPU) -> fc2 -> fc3 (bf16-in / f32-acc MXU) -> fused head.
# ---------------------------------------------------------------------------
def age_prior_kernel(age_ref, w1_ref, b1_ref, w2_ref, b2_ref, w3_ref, b3_ref,
                     wh_ref, bh_ref, out_ref):
    # fc1: in_features == 1 -> VPU broadcast outer product beats a K=1 MXU matmul.
    age = age_ref[...]                                            # (TB, 1)  f32
    h = jnp.maximum(age * w1_ref[...] + b1_ref[...], 0.0)        # (TB, H)  f32

    # fc2 + ReLU   (Dropout(0.2) is identity at inference)
    h = jnp.dot(h.astype(w2_ref.dtype), w2_ref[...],
                preferred_element_type=jnp.float32) + b2_ref[...]
    h = jnp.maximum(h, 0.0)

    # fc3 + ReLU
    h = jnp.dot(h.astype(w3_ref.dtype), w3_ref[...],
                preferred_element_type=jnp.float32) + b3_ref[...]
    h = jnp.maximum(h, 0.0)

    # fused mean|logvar head (f32 weights), zero-padded to lane-dense width
    y = jnp.dot(h.astype(wh_ref.dtype), wh_ref[...],
                preferred_element_type=jnp.float32) + bh_ref[...]
    out_ref[...] = y.astype(out_ref.dtype)


# ---------------------------------------------------------------------------
# One-time weight preparation (hoisted out of the per-call forward path).
# ---------------------------------------------------------------------------
def prepare_params(params, *, hidden_matmul_dtype=jnp.bfloat16,
                   head_matmul_dtype=jnp.float32):
    """Pack/cast weights once; reuse the result across forward calls."""
    H = params["w2"].shape[0]
    L = params["wm"].shape[1]
    HP = _round_up(max(2 * L, 128), 128)          # lane-dense fused-head width

    wh = jnp.zeros((H, HP), jnp.float32)
    wh = wh.at[:, :L].set(params["wm"]).at[:, L:2 * L].set(params["wl"])
    bh = jnp.zeros((1, HP), jnp.float32)
    bh = bh.at[:, :L].set(params["bm"]).at[:, L:2 * L].set(params["bl"])

    prepped = dict(
        w1=jnp.asarray(params["w1"], jnp.float32),
        b1=jnp.asarray(params["b1"], jnp.float32),
        w2=jnp.asarray(params["w2"], hidden_matmul_dtype),
        b2=jnp.asarray(params["b2"], jnp.float32),
        w3=jnp.asarray(params["w3"], hidden_matmul_dtype),
        b3=jnp.asarray(params["b3"], jnp.float32),
        wh=jnp.asarray(wh, head_matmul_dtype),    # head kept f32 for precision
        bh=bh,
    )
    meta = dict(H=H, L=L, HP=HP)
    return prepped, meta


def _pick_tile(B, tile_b):
    """Padding-aware batch tile; >=2 grid steps for large B (v7x dual-TC)."""
    B8 = _round_up(max(B, 8), 8)
    n_steps = max(1, _cdiv(B8, tile_b))
    if B8 >= 1024:                     # split so the "parallel" axis can use both TCs
        n_steps = max(n_steps, 2)
    TB = _round_up(_cdiv(B8, n_steps), 8)
    B_pad = _round_up(B8, TB)
    return TB, B_pad


def age_prior_forward_packed(age, prepped, meta, *, tile_b=2048,
                             out_dtype=jnp.float32):
    """Run the kernel; returns packed (B_pad, HP) output: [:, :L]=mean, [:, L:2L]=logvar."""
    B = age.shape[0]
    H, HP = meta["H"], meta["HP"]

    TB, B_pad = _pick_tile(B, tile_b)
    if B_pad != B:
        age = jnp.pad(age, ((0, B_pad - B), (0, 0)))
    grid = (B_pad // TB,)

    # Weights/biases pinned to block (0, 0) every grid step -> stay VMEM-resident.
    keep = lambda shape: pl.BlockSpec(shape, lambda i: (0, 0))

    # Rough double-buffered VMEM footprint; only raise the scoped limit if it
    # approaches v5e's 16 MiB default (never at tile_b<=2048).
    out_bytes = jnp.dtype(out_dtype).itemsize
    w_bytes = (2 * prepped["w2"].dtype.itemsize * H * H
               + prepped["wh"].dtype.itemsize * H * HP)
    est_vmem = 2 * (TB * (4 + HP * out_bytes) + w_bytes + 6 * 4 * HP)
    vmem_limit = (int(min(2 * est_vmem, 100 * 1024 * 1024))
                  if est_vmem > 12 * 1024 * 1024 else None)

    out = pl.pallas_call(
        age_prior_kernel,
        out_shape=jax.ShapeDtypeStruct((B_pad, HP), out_dtype),
        grid=grid,
        in_specs=[
            pl.BlockSpec((TB, 1), lambda i: (i, 0)),      # age tile (pipelined)
            keep((1, H)), keep((1, H)),                   # w1, b1 (f32, VPU path)
            keep((H, H)), keep((1, H)),                   # w2 (bf16), b2 (f32)
            keep((H, H)), keep((1, H)),                   # w3 (bf16), b3 (f32)
            keep((H, HP)), keep((1, HP)),                 # fused head w (f32), b (f32)
        ],
        out_specs=pl.BlockSpec((TB, HP), lambda i: (i, 0)),
        compiler_params=pltpu.CompilerParams(
            dimension_semantics=("parallel",),            # dual-TC sharding on v7x
            vmem_limit_bytes=vmem_limit),
    )(age, prepped["w1"], prepped["b1"], prepped["w2"], prepped["b2"],
      prepped["w3"], prepped["b3"], prepped["wh"], prepped["bh"])
    return out


def age_prior_forward(age, prepped, meta, **kwargs):
    """(pz_mean, pz_logvar). For max throughput, consume the packed layout directly
    (age_prior_forward_packed); under jit these slices are tiny vs the kernel writeback."""
    B = age.shape[0]
    L = meta["L"]
    out = age_prior_forward_packed(age, prepped, meta, **kwargs)
    return out[:B, :L], out[:B, L:2 * L]


# ---------------------------------------------------------------------------
# Synthetic init + pure-JAX reference
# ---------------------------------------------------------------------------
def init_params(key, latent_dim=32, hidden_dim=128):
    """Deterministic synthetic init (PyTorch Linear shapes, stored transposed)."""
    ks = jax.random.split(key, 10)
    scale = 0.1

    def lin(kw, kb, fan_in, fan_out):
        w = scale * jax.random.normal(kw, (fan_in, fan_out), jnp.float32)
        b = scale * jax.random.normal(kb, (1, fan_out), jnp.float32)
        return w, b

    w1, b1 = lin(ks[0], ks[1], 1, hidden_dim)
    w2, b2 = lin(ks[2], ks[3], hidden_dim, hidden_dim)
    w3, b3 = lin(ks[4], ks[5], hidden_dim, hidden_dim)
    wm, bm = lin(ks[6], ks[7], hidden_dim, latent_dim)
    wl, bl = lin(ks[8], ks[9], hidden_dim, latent_dim)
    return dict(w1=w1, b1=b1, w2=w2, b2=b2, w3=w3, b3=b3,
                wm=wm, bm=bm, wl=wl, bl=bl)


def reference_forward(age, p, *, hidden_matmul_dtype=jnp.bfloat16,
                      head_matmul_dtype=jnp.float32):
    """Pure-JAX reference mirroring the kernel's precision choices
    (bf16-in/f32-acc hidden matmuls, f32 head)."""
    relu = lambda x: jnp.maximum(x, 0.0)

    def mm(x, w, dt):
        return jnp.dot(x.astype(dt), w.astype(dt),
                       preferred_element_type=jnp.float32)

    h = relu(age * p["w1"] + p["b1"])
    h = relu(mm(h, p["w2"], hidden_matmul_dtype) + p["b2"])   # dropout: identity (eval)
    h = relu(mm(h, p["w3"], hidden_matmul_dtype) + p["b3"])
    pz_mean = mm(h, p["wm"], head_matmul_dtype) + p["bm"]
    pz_logvar = mm(h, p["wl"], head_matmul_dtype) + p["bl"]
    return pz_mean, pz_logvar


if __name__ == "__main__":
    key = jax.random.PRNGKey(0)
    k_age, k_age2, k_params = jax.random.split(key, 3)

    latent_dim, hidden_dim = 32, 128
    params = init_params(k_params, latent_dim=latent_dim, hidden_dim=hidden_dim)

    # One-time weight packing/casting; reused across every forward call.
    prepped, meta = prepare_params(params)
    fwd = jax.jit(functools.partial(age_prior_forward, meta=meta))

    # Tolerance note (explicit, per review): hidden matmuls are bf16-in/f32-acc in BOTH
    # the kernel and the reference, so they match almost exactly; the slack below only
    # covers possible differences in internal MXU precision of the f32 head matmul
    # between Mosaic and XLA. This is NOT a pure-f32 PyTorch-parity bound.
    tol = dict(atol=5e-2, rtol=2e-2)

    # --- small batch (module-default dims): single grid step ---
    B = 8
    age = jax.random.uniform(k_age, (B, 1), jnp.float32)      # normalized age in [0, 1)
    pz_mean, pz_logvar = jax.block_until_ready(fwd(age, prepped))
    assert pz_mean.shape == (B, latent_dim) and pz_logvar.shape == (B, latent_dim)
    ref_mean, ref_logvar = reference_forward(age, params)
    assert jnp.allclose(pz_mean, ref_mean, **tol)
    assert jnp.allclose(pz_logvar, ref_logvar, **tol)

    # --- medium batch: exercises padding-aware tiling + 2-step "parallel" grid ---
    B2 = 1030                                                  # pads 1030 -> 1040, grid=(2,)
    age2 = jax.random.uniform(k_age2, (B2, 1), jnp.float32)
    m2, lv2 = jax.block_until_ready(fwd(age2, prepped))
    assert m2.shape == (B2, latent_dim) and lv2.shape == (B2, latent_dim)
    r_m2, r_lv2 = reference_forward(age2, params)
    assert jnp.allclose(m2, r_m2, **tol)
    assert jnp.allclose(lv2, r_lv2, **tol)

    print("KERNEL_OK")
</pallas_src>

<mosaic_0001>
module attributes {stable_mosaic.version = 11 : i64} {
  func.func @age_prior_kernel(%arg0: i32, %arg1: memref<8x1xf32, #tpu.memory_space<vmem>>, %arg2: memref<1x128xf32, #tpu.memory_space<vmem>>, %arg3: memref<1x128xf32, #tpu.memory_space<vmem>>, %arg4: memref<128x128xbf16, #tpu.memory_space<vmem>>, %arg5: memref<1x128xf32, #tpu.memory_space<vmem>>, %arg6: memref<128x128xbf16, #tpu.memory_space<vmem>>, %arg7: memref<1x128xf32, #tpu.memory_space<vmem>>, %arg8: memref<128x128xf32, #tpu.memory_space<vmem>>, %arg9: memref<1x128xf32, #tpu.memory_space<vmem>>, %arg10: memref<8x128xf32, #tpu.memory_space<vmem>>) attributes {dimension_semantics = [#tpu.dimension_semantics<parallel>], iteration_bounds = array<i64: 1>, scalar_prefetch = 0 : i64, scratch_operands = 0 : i64, tpu.core_type = #tpu.core_type<tc>, window_params = [{transform_indices = @transform_0, window_bounds = array<i64: 8, 1>}, {pipeline_mode = #tpu.pipeline_mode<synchronous>, transform_indices = @transform_1, window_bounds = array<i64: 1, 128>}, {pipeline_mode = #tpu.pipeline_mode<synchronous>, transform_indices = @transform_2, window_bounds = array<i64: 1, 128>}, {pipeline_mode = #tpu.pipeline_mode<synchronous>, transform_indices = @transform_3, window_bounds = array<i64: 128, 128>}, {pipeline_mode = #tpu.pipeline_mode<synchronous>, transform_indices = @transform_4, window_bounds = array<i64: 1, 128>}, {pipeline_mode = #tpu.pipeline_mode<synchronous>, transform_indices = @transform_5, window_bounds = array<i64: 128, 128>}, {pipeline_mode = #tpu.pipeline_mode<synchronous>, transform_indices = @transform_6, window_bounds = array<i64: 1, 128>}, {pipeline_mode = #tpu.pipeline_mode<synchronous>, transform_indices = @transform_7, window_bounds = array<i64: 128, 128>}, {pipeline_mode = #tpu.pipeline_mode<synchronous>, transform_indices = @transform_8, window_bounds = array<i64: 1, 128>}, {transform_indices = @transform_9, window_bounds = array<i64: 8, 128>}]} {
    %c0 = arith.constant 0 : index
    %c0_0 = arith.constant 0 : index
    %0 = vector.load %arg1[%c0, %c0_0] : memref<8x1xf32, #tpu.memory_space<vmem>>, vector<8x1xf32>
    %c0_1 = arith.constant 0 : index
    %c0_2 = arith.constant 0 : index
    %1 = vector.load %arg2[%c0_1, %c0_2] : memref<1x128xf32, #tpu.memory_space<vmem>>, vector<1x128xf32>
    %2 = vector.broadcast %0 : vector<8x1xf32> to vector<8x128xf32>
    %3 = vector.broadcast %1 : vector<1x128xf32> to vector<8x128xf32>
    %4 = arith.mulf %2, %3 : vector<8x128xf32>
    %c0_3 = arith.constant 0 : index
    %c0_4 = arith.constant 0 : index
    %5 = vector.load %arg3[%c0_3, %c0_4] : memref<1x128xf32, #tpu.memory_space<vmem>>, vector<1x128xf32>
    %6 = vector.broadcast %5 : vector<1x128xf32> to vector<8x128xf32>
    %7 = arith.addf %4, %6 : vector<8x128xf32>
    %cst = arith.constant 0.000000e+00 : f32
    %8 = vector.broadcast %cst : f32 to vector<8x128xf32>
    %9 = arith.maximumf %7, %8 : vector<8x128xf32>
    %10 = arith.truncf %9 : vector<8x128xf32> to vector<8x128xbf16>
    %c0_5 = arith.constant 0 : index
    %c0_6 = arith.constant 0 : index
    %11 = vector.load %arg4[%c0_5, %c0_6] : memref<128x128xbf16, #tpu.memory_space<vmem>>, vector<128x128xbf16>
    %cst_7 = arith.constant dense<0.000000e+00> : vector<8x128xf32>
    %12 = tpu.matmul %10, %11, %cst_7 {dimension_numbers = #tpu.dot_dimension_numbers<[1], [0], [0], [1], [0, 0, 1, 1], [], []>} : vector<8x128xbf16>, vector<128x128xbf16>, vector<8x128xf32> -> vector<8x128xf32>
    %c0_8 = arith.constant 0 : index
    %c0_9 = arith.constant 0 : index
    %13 = vector.load %arg5[%c0_8, %c0_9] : memref<1x128xf32, #tpu.memory_space<vmem>>, vector<1x128xf32>
    %14 = vector.broadcast %13 : vector<1x128xf32> to vector<8x128xf32>
    %15 = arith.addf %12, %14 : vector<8x128xf32>
    %cst_10 = arith.constant 0.000000e+00 : f32
    %16 = vector.broadcast %cst_10 : f32 to vector<8x128xf32>
    %17 = arith.maximumf %15, %16 : vector<8x128xf32>
    %18 = arith.truncf %17 : vector<8x128xf32> to vector<8x128xbf16>
    %c0_11 = arith.constant 0 : index
    %c0_12 = arith.constant 0 : index
    %19 = vector.load %arg6[%c0_11, %c0_12] : memref<128x128xbf16, #tpu.memory_space<vmem>>, vector<128x128xbf16>
    %cst_13 = arith.constant dense<0.000000e+00> : vector<8x128xf32>
    %20 = tpu.matmul %18, %19, %cst_13 {dimension_numbers = #tpu.dot_dimension_numbers<[1], [0], [0], [1], [0, 0, 1, 1], [], []>} : vector<8x128xbf16>, vector<128x128xbf16>, vector<8x128xf32> -> vector<8x128xf32>
    %c0_14 = arith.constant 0 : index
    %c0_15 = arith.constant 0 : index
    %21 = vector.load %arg7[%c0_14, %c0_15] : memref<1x128xf32, #tpu.memory_space<vmem>>, vector<1x128xf32>
    %22 = vector.broadcast %21 : vector<1x128xf32> to vector<8x128xf32>
    %23 = arith.addf %20, %22 : vector<8x128xf32>
    %cst_16 = arith.constant 0.000000e+00 : f32
    %24 = vector.broadcast %cst_16 : f32 to vector<8x128xf32>
    %25 = arith.maximumf %23, %24 : vector<8x128xf32>
    %c0_17 = arith.constant 0 : index
    %c0_18 = arith.constant 0 : index
    %26 = vector.load %arg8[%c0_17, %c0_18] : memref<128x128xf32, #tpu.memory_space<vmem>>, vector<128x128xf32>
    %cst_19 = arith.constant dense<0.000000e+00> : vector<8x128xf32>
    %27 = tpu.matmul %25, %26, %cst_19 {dimension_numbers = #tpu.dot_dimension_numbers<[1], [0], [0], [1], [0, 0, 1, 1], [], []>} : vector<8x128xf32>, vector<128x128xf32>, vector<8x128xf32> -> vector<8x128xf32>
    %c0_20 = arith.constant 0 : index
    %c0_21 = arith.constant 0 : index
    %28 = vector.load %arg9[%c0_20, %c0_21] : memref<1x128xf32, #tpu.memory_space<vmem>>, vector<1x128xf32>
    %29 = vector.broadcast %28 : vector<1x128xf32> to vector<8x128xf32>
    %30 = arith.addf %27, %29 : vector<8x128xf32>
    %c0_22 = arith.constant 0 : index
    %c0_23 = arith.constant 0 : index
    %31 = vector.load %arg10[%c0_22, %c0_23] : memref<8x128xf32, #tpu.memory_space<vmem>>, vector<8x128xf32>
    tpu.vector_store %arg10[%c0_22, %c0_23], %30 {strides = array<i32>} : memref<8x128xf32, #tpu.memory_space<vmem>>, vector<8x128xf32>,
    return
  }
  func.func @transform_0(%arg0: i32) -> (i32, i32) {
    %c0_i32 = arith.constant 0 : i32
    %c0_i32_0 = arith.constant 0 : i32
    return %arg0, %c0_i32 : i32, i32
  }
  func.func @transform_1(%arg0: i32) -> (i32, i32) {
    %c0_i32 = arith.constant 0 : i32
    %c0_i32_0 = arith.constant 0 : i32
    %c0_i32_1 = arith.constant 0 : i32
    return %c0_i32, %c0_i32_0 : i32, i32
  }
  func.func @transform_2(%arg0: i32) -> (i32, i32) {
    %c0_i32 = arith.constant 0 : i32
    %c0_i32_0 = arith.constant 0 : i32
    %c0_i32_1 = arith.constant 0 : i32
    return %c0_i32, %c0_i32_0 : i32, i32
  }
  func.func @transform_3(%arg0: i32) -> (i32, i32) {
    %c0_i32 = arith.constant 0 : i32
    %c0_i32_0 = arith.constant 0 : i32
    %c0_i32_1 = arith.constant 0 : i32
    return %c0_i32, %c0_i32_0 : i32, i32
  }
  func.func @transform_4(%arg0: i32) -> (i32, i32) {
    %c0_i32 = arith.constant 0 : i32
    %c0_i32_0 = arith.constant 0 : i32
    %c0_i32_1 = arith.constant 0 : i32
    return %c0_i32, %c0_i32_0 : i32, i32
  }
  func.func @transform_5(%arg0: i32) -> (i32, i32) {
    %c0_i32 = arith.constant 0 : i32
    %c0_i32_0 = arith.constant 0 : i32
    %c0_i32_1 = arith.constant 0 : i32
    return %c0_i32, %c0_i32_0 : i32, i32
  }
  func.func @transform_6(%arg0: i32) -> (i32, i32) {
    %c0_i32 = arith.constant 0 : i32
    %c0_i32_0 = arith.constant 0 : i32
    %c0_i32_1 = arith.constant 0 : i32
    return %c0_i32, %c0_i32_0 : i32, i32
  }
  func.func @transform_7(%arg0: i32) -> (i32, i32) {
    %c0_i32 = arith.constant 0 : i32
    %c0_i32_0 = arith.constant 0 : i32
    %c0_i32_1 = arith.constant 0 : i32
    return %c0_i32, %c0_i32_0 : i32, i32
  }
  func.func @transform_8(%arg0: i32) -> (i32, i32) {
    %c0_i32 = arith.constant 0 : i32
    %c0_i32_0 = arith.constant 0 : i32
    %c0_i32_1 = arith.constant 0 : i32
    return %c0_i32, %c0_i32_0 : i32, i32
  }
  func.func @transform_9(%arg0: i32) -> (i32, i32) {
    %c0_i32 = arith.constant 0 : i32
    %c0_i32_0 = arith.constant 0 : i32
    return %arg0, %c0_i32 : i32, i32
  }
}

</mosaic_0001>

<bundles_post_ra>
// kernel: age_prior_forward.1
= control target key start
LH: loop header
LB: loop body
LE: loop exit
PB: predicated region body
PF: predicated region fallthrough
CT: control target
= control target key end

     0   :  { %14 = vsyncpa [#allocation3], 0  ;;  %s567_s0 = inlined_call_operand.vmem [shape: f32[8,1], index: 0, kind: input, shape index: {}]   ;;  %s568_s1 = inlined_call_operand.vmem [shape: f32[1,128], index: 1, kind: input, shape index: {}]   ;;  %s569_s2 = inlined_call_operand.vmem [shape: f32[1,128], index: 2, kind: input, shape index: {}]   ;;  %s570_s3 = inlined_call_operand.hbm [shape: bf16[128,128], index: 3, kind: input, shape index: {}]   ;;  %s571_s4 = inlined_call_operand.vmem [shape: f32[1,128], index: 4, kind: input, shape index: {}]   ;;  %s572_s5 = inlined_call_operand.hbm [shape: bf16[128,128], index: 5, kind: input, shape index: {}]   ;;  %s573_s6 = inlined_call_operand.vmem [shape: f32[1,128], index: 6, kind: input, shape index: {}]   ;;  %s574_s7 = inlined_call_operand.hbm [shape: f32[128,128], index: 7, kind: input, shape index: {}]   ;;  %s575_s8 = inlined_call_operand.vmem [shape: f32[1,128], index: 8, kind: input, shape index: {}]   ;;  %s576_s9 = inlined_call_operand.vmem [shape: f32[8,128], index: 9, kind: output, shape index: {}]  }
   0x1   :  { %15 = vsyncpa [#allocation5], 0  ;;  %s41_s11 = sshll.u32 %s572_s5, 4  ;;  %s479_s12 = smov [#allocation4]   ;;  %s42_s11 = int_to_ptr.hbm [resolvable:$true] %s41_s11 }
   0x2   :  { %s43_s13 = sshll.u32 %s479_s12, 4  ;;  %s26_s16 = sshll.u32 %s570_s3, 4  ;;  %s44_s13 = int_to_ptr.vmem [resolvable:$true] %s43_s13  ;;  %s27_s16 = int_to_ptr.hbm [resolvable:$true] %s26_s16 }
   0x3   :  { %s480_s17 = smov 64   ;;  %s481_s18 = smov 4  }
   0x4   :  { %49 = dma.hbm_to_vmem [thread:$0]  %s42_s11, 1024, %s44_s13, [#allocation5], %s480_s17, %s480_s17, %s481_s18  }
   0x5   :  { %s482_s19 = smov [#allocation2]   ;;  %s56_s23 = sshll.u32 %s574_s7, 4  ;;  %s57_s23 = int_to_ptr.hbm [resolvable:$true] %s56_s23 }
   0x6   :  { %s28_s20 = sshll.u32 %s482_s19, 4  ;;  %s483_s5 = smov [#allocation6]   ;;  %s29_s20 = int_to_ptr.vmem [resolvable:$true] %s28_s20 }
   0x7   :  { %34 = dma.hbm_to_vmem [thread:$0]  %s27_s16, 1024, %s29_s20, [#allocation3], %s480_s17, %s480_s17, %s481_s18  }
   0x8   :  { %s58_s24 = sshll.u32 %s483_s5, 4  ;;  %s484_s25 = smov 128   ;;  %s59_s24 = int_to_ptr.vmem [resolvable:$true] %s58_s24 }
   0x9   :  { %s485_s26 = smov 8  }
   0xa   :  { %64 = dma.hbm_to_vmem [thread:$0]  %s57_s23, 2048, %s59_s24, [#allocation5], %s484_s25, %s484_s25, %s485_s26  }
   0xb   :  { %475 = dma.done.wait [#allocation3], 1024  }
   0xc   :  { %476 = vsyncadd [#allocation3], 4294966272 }
   0xd   :  { %477 = dma.done.wait [#allocation5], 3072  }
   0xe   :  { %478 = vsyncadd [#allocation5], 4294964224  ;;  %v486_v0 = vmov 0   ;;  %v79_v1 = vld [vmem:[%s567_s0] sm:$0xff]  ;;  %v380_v2 = vld [vmem:[#allocation2 + $0x38] sm:$0xff] }
   0xf   :  { %397 = vset.pattern.permute.xlu0 %v486_v0  ;;  %165 = vmatpush.bf16.msra.mxu0 %v380_v2  ;;  %v379_v3 = vld [vmem:[#allocation2 + $0x30] sm:$0xff]  ;;  %v378_v4 = vld [vmem:[#allocation2 + $0x28] sm:$0xff]  ;;  %v377_v5 = vld [vmem:[#allocation2 + $0x20] sm:$0xff] }
  0x10   :  { %83 = vperm.xlu0 %397, %v79_v1   ;;  %v376_v6 = vld [vmem:[#allocation2 + $0x18] sm:$0xff]  ;;  %v375_v7 = vld [vmem:[#allocation2 + $0x10] sm:$0xff]  ;;  %v374_v8 = vld [vmem:[#allocation2 + $0x8] sm:$0xff] }
  0x11   :  { %v373_v9 = vld [vmem:[#allocation2] sm:$0xff]  ;;  %v388_v10 = vld [vmem:[#allocation4 + $0x38] sm:$0xff]  ;;  %v387_v11 = vld [vmem:[#allocation4 + $0x30] sm:$0xff] }
  0x12   :  { %248 = vmatpush.bf16.msra.mxu1 %v388_v10  ;;  %v386_v12 = vld [vmem:[#allocation4 + $0x28] sm:$0xff]  ;;  %v385_v13 = vld [vmem:[#allocation4 + $0x20] sm:$0xff]  ;;  %v384_v14 = vld [vmem:[#allocation4 + $0x18] sm:$0xff] }
  0x13   :  { %166 = vmatpush.bf16.msra.mxu0 %v379_v3  ;;  %v383_v15 = vld [vmem:[#allocation4 + $0x10] sm:$0xff]  ;;  %v398_v16 = vld [vmem:[%s568_s1] ss:$0 sm:$0xff]  ;;  %v382_v23 = vld [vmem:[#allocation4 + $0x8] sm:$0xff] }
  0x14   :  { %v399_v17 = vld [vmem:[%s569_s2] ss:$0 sm:$0xff]  ;;  %v277_v25 = vld [vmem:[#allocation6 + $0x78] sm:$0xff]  ;;  %v276_v26 = vld [vmem:[#allocation6 + $0x70] sm:$0xff] }
  0x15   :  { %v381_v24 = vld [vmem:[#allocation4] sm:$0xff]  ;;  %282 = vmatpush.msra.mxu2 %v277_v25  ;;  %v275_v27 = vld [vmem:[#allocation6 + $0x68] sm:$0xff]  ;;  %v273_v29 = vld [vmem:[#allocation6 + $0x58] sm:$0xff] }
  0x16   :  { %249 = vmatpush.bf16.msra.mxu1 %v387_v11  ;;  %v274_v28 = vld [vmem:[#allocation6 + $0x60] sm:$0xff]  ;;  %v272_v30 = vld [vmem:[#allocation6 + $0x50] sm:$0xff]  ;;  %v271_v31 = vld [vmem:[#allocation6 + $0x48] sm:$0xff] }
  0x17   :  { %167 = vmatpush.bf16.msra.mxu0 %v378_v4  ;;  %283 = vmatpush.msra.mxu2 %v276_v26  ;;  %v270_v32 = vld [vmem:[#allocation6 + $0x40] sm:$0xff]  ;;  %v269_v33 = vld [vmem:[#allocation6 + $0x38] sm:$0xff]  ;;  %v268_v34 = vld [vmem:[#allocation6 + $0x30] sm:$0xff] }
  0x18   :  { %v267_v35 = vld [vmem:[#allocation6 + $0x28] sm:$0xff]  ;;  %v266_v36 = vld [vmem:[#allocation6 + $0x20] sm:$0xff]  ;;  %v265_v38 = vld [vmem:[#allocation6 + $0x18] sm:$0xff] }
  0x19   :  { %284 = vmatpush.msra.mxu2 %v275_v27  ;;  %v400_v37 = vld [vmem:[%s571_s4] ss:$0 sm:$0xff]  ;;  %v264_v44 = vld [vmem:[#allocation6 + $0x10] sm:$0xff]  ;;  %v263_v45 = vld [vmem:[#allocation6 + $0x8] sm:$0xff] }
  0x1a   :  { %250 = vmatpush.bf16.msra.mxu1 %v386_v12  ;;  %v262_v46 = vld [vmem:[#allocation6] sm:$0xff] }
  0x1b   :  { %168 = vmatpush.bf16.msra.mxu0 %v377_v5  ;;  %285 = vmatpush.msra.mxu2 %v274_v28  ;;  %v401_v47 = vld [vmem:[%s573_s6] ss:$0 sm:$0xff] }
  0x1c   :  { %v402_v52 = vld [vmem:[%s575_s8] ss:$0 sm:$0xff] }
  0x1d   :  { %286 = vmatpush.msra.mxu2 %v273_v29 }
  0x1e   :  { %251 = vmatpush.bf16.msra.mxu1 %v385_v13 }
  0x1f   :  { %169 = vmatpush.bf16.msra.mxu0 %v376_v6  ;;  %287 = vmatpush.msra.mxu2 %v272_v30 }
  0x21   :  { %288 = vmatpush.msra.mxu2 %v271_v31 }
  0x22   :  { %252 = vmatpush.bf16.msra.mxu1 %v384_v14 }
  0x23   :  { %170 = vmatpush.bf16.msra.mxu0 %v375_v7  ;;  %289 = vmatpush.msra.mxu2 %v270_v32 }
  0x25   :  { %290 = vmatpush.msra.mxu2 %v269_v33 }
  0x26   :  { %253 = vmatpush.bf16.msra.mxu1 %v383_v15 }
  0x27   :  { %171 = vmatpush.bf16.msra.mxu0 %v374_v8  ;;  %291 = vmatpush.msra.mxu2 %v268_v34 }
  0x29   :  { %292 = vmatpush.msra.mxu2 %v267_v35 }
  0x2a   :  { %254 = vmatpush.bf16.msra.mxu1 %v382_v23 }
  0x2b   :  { %172 = vmatpush.bf16.msra.mxu0 %v373_v9  ;;  %293 = vmatpush.msra.mxu2 %v266_v36 }
  0x2d   :  { %294 = vmatpush.msra.mxu2 %v265_v38 }
  0x2e   :  { %255 = vmatpush.bf16.msra.mxu1 %v381_v24 }
  0x2f   :  { %295 = vmatpush.msra.mxu2 %v264_v44 }
  0x31   :  { %296 = vmatpush.msra.mxu2 %v263_v45 }
  0x33   :  { %297 = vmatpush.msra.mxu2 %v262_v46 }
  0x82   :  { %v84_v18 = vpop.permute.xlu0 %83 }
  0x83   :  { %v89_v19 = vmul.f32 %v398_v16, %v84_v18 }
  0x85   :  { %v94_v20 = vadd.f32 %v399_v17, %v89_v19 }
  0x87   :  { %v95_v21 = vmax.f32 %v94_v20, 0.0 }
  0x89   :  { %v96_v22 = vpack.c.bf16 %v95_v21, %v95_v21 }
  0x8b   :  { %173 = vmatmul.bf16.vlgmr.msra.gmra.mxu0 %v96_v22 }
 0x108   :  { %v174_v39 = vpop.f32.mrf.mxu0 }
 0x109   :  { %v175_v40 = vadd.f32 %v400_v37, %v174_v39 }
 0x10b   :  { %v178_v41 = vmax.f32 %v175_v40, 0.0 }
 0x10d   :  { %v179_v42 = vpack.c.bf16 %v178_v41, %v178_v41 }
 0x10f   :  { %256 = vmatmul.bf16.vlgmr.msra.gmra.mxu1 %v179_v42 }
 0x110   :  { %v176_v43 = vpop.f32.mrf.mxu0 }
 0x18c   :  { %v257_v48 = vpop.f32.mrf.mxu1 }
 0x18d   :  { %v258_v49 = vadd.f32 %v401_v47, %v257_v48 }
 0x18f   :  { %v261_v50 = vmax.f32 %v258_v49, 0.0 }
 0x191   :  { %298 = vmatmul.f32.vlgmr.msra.gmra.mxu2 %v261_v50 }
 0x194   :  { %v259_v51 = vpop.f32.mrf.mxu1 }
 0x214   :  { %v299_v53 = vpop.f32.mrf.mxu2 }
 0x215   :  { %v300_v54 = vadd.f32 %v402_v52, %v299_v53 }
 0x217   :  { %302 = vst [vmem:[%s576_s9] sm:$0xff] %v300_v54 }
 0x218   :  { %307 = vsyncpa [#allocation3], 1 }
 0x219   :  { %308 = vsyncpa [#allocation5], 1 }

</bundles_post_ra>
